<compile_context>
chip_gen: v5e
topology: v5e:2x2
jax: 0.10.0
libtpu: 0.0.40
codegen_flags: <defaults>
</compile_context>

<pallas_src>
import functools

import numpy as np
import jax
import jax.numpy as jnp
from jax import lax
from jax.experimental import pallas as pl
from jax.experimental.pallas import tpu as pltpu

_CHUNK = 8  # rotation steps per inner unrolled block (= sublane tile height)


def _round_up(x, m):
    return (x + m - 1) // m * m


def make_slice_schedule(in_features, out_features):
    """Replicates OrthoLayer.__init__ index bookkeeping (static numpy)."""
    larger = max(in_features, out_features)
    smaller = min(in_features, out_features)
    if larger == smaller:
        smaller -= 1  # matches the reference module
    x_end = np.concatenate(
        [np.arange(2, larger + 1), larger + 1 - np.arange(2, smaller + 1)])
    x_start = np.concatenate(
        [np.arange(x_end.shape[0] + smaller - larger) % 2,
         np.arange(larger - smaller)])
    sizes = x_end - x_start
    if in_features < out_features:
        x_end = x_end[::-1].copy()
        x_start = x_start[::-1].copy()
        sizes = sizes[::-1].copy()
    return x_start, x_end, sizes


def _choose_packing(F):
    """Return (f_sub, P, W): per-sample lane width, samples per row, row width."""
    if F <= 128:
        for d in (8, 16, 32, 64, 128):
            if d >= F:
                return d, 128 // d, 128
    # F > 128: no packing; the +-1 roll crosses vreg lane groups (correct,
    # just more XLU work per step).
    f_sub = _round_up(F, 128)
    return f_sub, 1, f_sub


@functools.lru_cache(maxsize=None)
def _coeff_tables(in_features, out_features, f_sub, pack, chunk):
    """Static per-step gather-index / parity-mask tables, lane-packed + padded."""
    starts, ends, sizes = make_slice_schedule(in_features, out_features)
    T = int(starts.shape[0])

    offs = np.zeros(T, np.int64)
    offs[1:] = np.cumsum(sizes // 2)[:-1]

    j = np.arange(f_sub)[None, :]                      # (1, f_sub)
    st = starts[:, None].astype(np.int64)              # (T, 1)
    en = ends[:, None].astype(np.int64)
    in_slice = (j >= st) & (j < en)                    # (T, f_sub)
    rel = j - st
    theta_idx = np.where(in_slice, offs[:, None] + rel // 2, 0).astype(np.int32)
    even = in_slice & (rel % 2 == 0)                   # first element of pair
    odd = in_slice & (rel % 2 == 1)                    # second element of pair

    # Packing / roll-wraparound safety: the coefficient reading the LEFT
    # neighbour (odd slots) must be zero at lane 0 of every sub-block and the
    # coefficient reading the RIGHT neighbour (even slots) must be zero at the
    # last lane, so the +-1 roll never mixes packed samples (or wraps).
    assert not odd[:, 0].any(), "left-neighbour coeff nonzero at sub-block start"
    assert not even[:, -1].any(), "right-neighbour coeff nonzero at sub-block end"

    # Tile the per-sample pattern across the `pack` samples sharing a row.
    theta_idx = np.tile(theta_idx, (1, pack))
    in_slice = np.tile(in_slice, (1, pack))
    even = np.tile(even, (1, pack))
    odd = np.tile(odd, (1, pack))

    # Pad the step axis to a multiple of `chunk` with identity steps.
    T_pad = _round_up(max(T, 1), chunk)

    def pad_T(a, fill):
        return np.concatenate(
            [a, np.full((T_pad - T, a.shape[1]), fill, dtype=a.dtype)], axis=0)

    theta_idx = pad_T(theta_idx, np.int32(0))
    in_slice = pad_T(in_slice, False)
    even = pad_T(even, False)
    odd = pad_T(odd, False)

    n_thetas = int(np.sum(sizes // 2))
    return theta_idx, in_slice, even, odd, T_pad, n_thetas


def ortho_kernel(x_ref, c_ref, se_ref, so_ref, bias_ref, out_ref):
    """Applies all Givens-rotation steps to one (TB, W) packed batch-row tile.

    The activation tile is carried as a fori_loop value (vreg-resident);
    coefficients live in VMEM (constant index_map, fetched once) and are read
    one 8-step chunk at a time; the bias add is folded into the final store.
    """
    w = out_ref.shape[-1]
    n_chunks = c_ref.shape[0]
    chunk = c_ref.shape[1]

    def chunk_body(ci, v):
        cs = c_ref[ci]       # (chunk, W)  cos inside slice, 1 outside
        ses = se_ref[ci]     # (chunk, W) -sin on even (pair-first) lanes
        sos = so_ref[ci]     # (chunk, W) +sin on odd (pair-second) lanes
        for r in range(chunk):                      # small static unroll
            right = pltpu.roll(v, w - 1, axis=1)    # right[j] = v[j + 1]
            left = pltpu.roll(v, 1, axis=1)         # left[j]  = v[j - 1]
            v = (cs[r:r + 1, :] * v
                 + ses[r:r + 1, :] * right
                 + sos[r:r + 1, :] * left)
        return v

    v = lax.fori_loop(0, n_chunks, chunk_body, x_ref[...])
    out_ref[...] = v + bias_ref[...]


@functools.partial(jax.jit, static_argnums=(3, 4))
def ortho_layer_forward(x, thetas, bias, in_features, out_features):
    assert x.shape[1] == in_features

    F = max(in_features, out_features)
    f_sub, P, W = _choose_packing(F)

    theta_idx, in_slice, even, odd, T_pad, n_thetas = _coeff_tables(
        in_features, out_features, f_sub, P, _CHUNK)
    assert thetas.shape[0] == n_thetas

    # Per-step per-lane coefficients (identity outside the active slice).
    th = jnp.take(thetas.astype(jnp.float32), jnp.asarray(theta_idx), axis=0)
    cos_t = jnp.cos(th)
    sin_t = jnp.sin(th)
    c = jnp.where(jnp.asarray(in_slice), cos_t, jnp.float32(1.0))
    se = jnp.where(jnp.asarray(even), -sin_t, jnp.float32(0.0))
    so = jnp.where(jnp.asarray(odd), sin_t, jnp.float32(0.0))
    n_chunks = T_pad // _CHUNK
    c = c.reshape(n_chunks, _CHUNK, W)
    se = se.reshape(n_chunks, _CHUNK, W)
    so = so.reshape(n_chunks, _CHUNK, W)

    # Batch-row packing: P samples per 128-lane row.
    B = x.shape[0]
    rows = -(-B // P)
    rows_pad = _round_up(max(rows, 1), 8)
    TB = min(128, rows_pad)
    if rows_pad >= 16 and rows_pad // TB < 2:   # v7x: keep both TensorCores busy
        TB = _round_up(-(-rows_pad // 2), 8)
    rows_pad = _round_up(rows_pad, TB)

    # Per-sample layout: [zero left-pad | features | zero lane-pad], width
    # f_sub; P such sub-blocks per 128-lane row.
    xs = jnp.zeros((rows_pad * P, f_sub), jnp.float32)
    xs = xs.at[:B, F - in_features:F].set(x.astype(jnp.float32))
    x_pack = xs.reshape(rows_pad, W)

    bias_sub = jnp.zeros((f_sub,), jnp.float32)
    bias_sub = bias_sub.at[F - out_features:F].set(bias.astype(jnp.float32))
    bias_row = jnp.tile(bias_sub, (P,)).reshape(1, W)

    y = pl.pallas_call(
        ortho_kernel,
        out_shape=jax.ShapeDtypeStruct((rows_pad, W), jnp.float32),
        grid=(rows_pad // TB,),
        in_specs=[
            pl.BlockSpec((TB, W), lambda b: (b, 0)),                   # packed x
            pl.BlockSpec((n_chunks, _CHUNK, W), lambda b: (0, 0, 0)),  # cos
            pl.BlockSpec((n_chunks, _CHUNK, W), lambda b: (0, 0, 0)),  # -sin@even
            pl.BlockSpec((n_chunks, _CHUNK, W), lambda b: (0, 0, 0)),  # +sin@odd
            pl.BlockSpec((1, W), lambda b: (0, 0)),                    # bias row
        ],
        out_specs=pl.BlockSpec((TB, W), lambda b: (b, 0)),
        compiler_params=pltpu.CompilerParams(
            dimension_semantics=("parallel",)),
    )(x_pack, c, se, so, bias_row)

    y = y.reshape(rows_pad * P, f_sub)[:B, F - out_features:F]
    return y.astype(x.dtype)


def ortho_layer_reference(x, thetas, bias, in_features, out_features):
    """Pure-JAX faithful replica of OrthoLayer.hidden_layer (for checking)."""
    starts, ends, sizes = make_slice_schedule(in_features, out_features)
    if in_features < out_features:
        x = jnp.pad(x, ((0, 0), (out_features - in_features, 0)))
    tsi = 0
    for i in range(len(starts)):
        n = int(sizes[i]) // 2
        th = thetas[tsi:tsi + n]
        tsi += n
        cth, sth = jnp.cos(th), jnp.sin(th)
        sl = x[:, int(starts[i]):int(ends[i])].reshape(x.shape[0], n, 2)
        e, o = sl[..., 0], sl[..., 1]
        rot = jnp.stack([e * cth - o * sth, e * sth + o * cth], axis=-1)
        rot = rot.reshape(x.shape[0], 2 * n)
        x = x.at[:, int(starts[i]):int(ends[i])].set(rot)
    if in_features > out_features:
        x = x[:, in_features - out_features:]
    return x + bias


if __name__ == "__main__":
    key = jax.random.PRNGKey(0)
    B = 8
    ok = True
    for in_f, out_f in [(24, 16), (16, 24), (16, 16)]:
        larger, smaller = max(in_f, out_f), min(in_f, out_f)
        n_thetas = int((2 * larger - 1 - smaller) * smaller / 2)
        key, k_theta, k_x, k_b = jax.random.split(key, 4)
        thetas = jax.random.normal(k_theta, (n_thetas,), dtype=jnp.float32)
        bias = 0.1 * jax.random.normal(k_b, (out_f,), dtype=jnp.float32)
        x = jax.random.normal(k_x, (B, in_f), dtype=jnp.float32)

        y = ortho_layer_forward(x, thetas, bias, in_f, out_f)
        y = jax.block_until_ready(y)

        y_ref = ortho_layer_reference(x, thetas, bias, in_f, out_f)
        if not np.allclose(np.asarray(y), np.asarray(y_ref), atol=1e-3, rtol=1e-3):
            ok = False
            print(f"mismatch for ({in_f},{out_f}): "
                  f"max err {np.abs(np.asarray(y) - np.asarray(y_ref)).max()}")

    if ok:
        print("KERNEL_OK")
</pallas_src>

<mosaic_0001>
module attributes {stable_mosaic.version = 11 : i64} {
  func.func @ortho_kernel(%arg0: i32, %arg1: memref<8x128xf32, #tpu.memory_space<vmem>>, %arg2: memref<5x8x128xf32, #tpu.memory_space<vmem>>, %arg3: memref<5x8x128xf32, #tpu.memory_space<vmem>>, %arg4: memref<5x8x128xf32, #tpu.memory_space<vmem>>, %arg5: memref<1x128xf32, #tpu.memory_space<vmem>>, %arg6: memref<8x128xf32, #tpu.memory_space<vmem>>) attributes {dimension_semantics = [#tpu.dimension_semantics<parallel>], iteration_bounds = array<i64: 1>, scalar_prefetch = 0 : i64, scratch_operands = 0 : i64, tpu.core_type = #tpu.core_type<tc>, window_params = [{transform_indices = @transform_0, window_bounds = array<i64: 8, 128>}, {pipeline_mode = #tpu.pipeline_mode<synchronous>, transform_indices = @transform_1, window_bounds = array<i64: 5, 8, 128>}, {pipeline_mode = #tpu.pipeline_mode<synchronous>, transform_indices = @transform_2, window_bounds = array<i64: 5, 8, 128>}, {pipeline_mode = #tpu.pipeline_mode<synchronous>, transform_indices = @transform_3, window_bounds = array<i64: 5, 8, 128>}, {pipeline_mode = #tpu.pipeline_mode<synchronous>, transform_indices = @transform_4, window_bounds = array<i64: 1, 128>}, {transform_indices = @transform_5, window_bounds = array<i64: 8, 128>}]} {
    %c0 = arith.constant 0 : index
    %c0_0 = arith.constant 0 : index
    %0 = vector.load %arg1[%c0, %c0_0] : memref<8x128xf32, #tpu.memory_space<vmem>>, vector<8x128xf32>
    %c0_i32 = arith.constant 0 : i32
    %c5_i32 = arith.constant 5 : i32
    %1 = arith.addi %c0_i32, %c5_i32 : i32
    %c1_i32 = arith.constant 1 : i32
    %2 = scf.for %arg7 = %c0_i32 to %1 step %c1_i32 iter_args(%arg8 = %0) -> (vector<8x128xf32>)  : i32 {
      %7 = arith.index_cast %arg7 : i32 to index
      %c0_6 = arith.constant 0 : index
      %c0_7 = arith.constant 0 : index
      %8 = vector.load %arg2[%7, %c0_6, %c0_7] : memref<5x8x128xf32, #tpu.memory_space<vmem>>, vector<1x8x128xf32>
      %9 = vector.shape_cast %8 : vector<1x8x128xf32> to vector<8x128xf32>
      %10 = arith.index_cast %arg7 : i32 to index
      %c0_8 = arith.constant 0 : index
      %c0_9 = arith.constant 0 : index
      %11 = vector.load %arg3[%10, %c0_8, %c0_9] : memref<5x8x128xf32, #tpu.memory_space<vmem>>, vector<1x8x128xf32>
      %12 = vector.shape_cast %11 : vector<1x8x128xf32> to vector<8x128xf32>
      %13 = arith.index_cast %arg7 : i32 to index
      %c0_10 = arith.constant 0 : index
      %c0_11 = arith.constant 0 : index
      %14 = vector.load %arg4[%13, %c0_10, %c0_11] : memref<5x8x128xf32, #tpu.memory_space<vmem>>, vector<1x8x128xf32>
      %15 = vector.shape_cast %14 : vector<1x8x128xf32> to vector<8x128xf32>
      %c127_i32 = arith.constant 127 : i32
      %16 = tpu.dynamic_rotate %arg8 by %c127_i32 dim 1 : vector<8x128xf32>, i32 -> vector<8x128xf32>
      %c1_i32_12 = arith.constant 1 : i32
      %17 = tpu.dynamic_rotate %arg8 by %c1_i32_12 dim 1 : vector<8x128xf32>, i32 -> vector<8x128xf32>
      %18 = vector.extract_strided_slice %9 {offsets = [0, 0], sizes = [1, 128], strides = [1, 1]} : vector<8x128xf32> to vector<1x128xf32>
      %19 = vector.broadcast %18 : vector<1x128xf32> to vector<8x128xf32>
      %20 = arith.mulf %19, %arg8 : vector<8x128xf32>
      %21 = vector.extract_strided_slice %12 {offsets = [0, 0], sizes = [1, 128], strides = [1, 1]} : vector<8x128xf32> to vector<1x128xf32>
      %22 = vector.broadcast %21 : vector<1x128xf32> to vector<8x128xf32>
      %23 = arith.mulf %22, %16 : vector<8x128xf32>
      %24 = arith.addf %20, %23 : vector<8x128xf32>
      %25 = vector.extract_strided_slice %15 {offsets = [0, 0], sizes = [1, 128], strides = [1, 1]} : vector<8x128xf32> to vector<1x128xf32>
      %26 = vector.broadcast %25 : vector<1x128xf32> to vector<8x128xf32>
      %27 = arith.mulf %26, %17 : vector<8x128xf32>
      %28 = arith.addf %24, %27 : vector<8x128xf32>
      %c127_i32_13 = arith.constant 127 : i32
      %29 = tpu.dynamic_rotate %28 by %c127_i32_13 dim 1 : vector<8x128xf32>, i32 -> vector<8x128xf32>
      %c1_i32_14 = arith.constant 1 : i32
      %30 = tpu.dynamic_rotate %28 by %c1_i32_14 dim 1 : vector<8x128xf32>, i32 -> vector<8x128xf32>
      %31 = vector.extract_strided_slice %9 {offsets = [1, 0], sizes = [1, 128], strides = [1, 1]} : vector<8x128xf32> to vector<1x128xf32>
      %32 = vector.broadcast %31 : vector<1x128xf32> to vector<8x128xf32>
      %33 = arith.mulf %32, %28 : vector<8x128xf32>
      %34 = vector.extract_strided_slice %12 {offsets = [1, 0], sizes = [1, 128], strides = [1, 1]} : vector<8x128xf32> to vector<1x128xf32>
      %35 = vector.broadcast %34 : vector<1x128xf32> to vector<8x128xf32>
      %36 = arith.mulf %35, %29 : vector<8x128xf32>
      %37 = arith.addf %33, %36 : vector<8x128xf32>
      %38 = vector.extract_strided_slice %15 {offsets = [1, 0], sizes = [1, 128], strides = [1, 1]} : vector<8x128xf32> to vector<1x128xf32>
      %39 = vector.broadcast %38 : vector<1x128xf32> to vector<8x128xf32>
      %40 = arith.mulf %39, %30 : vector<8x128xf32>
      %41 = arith.addf %37, %40 : vector<8x128xf32>
      %c127_i32_15 = arith.constant 127 : i32
      %42 = tpu.dynamic_rotate %41 by %c127_i32_15 dim 1 : vector<8x128xf32>, i32 -> vector<8x128xf32>
      %c1_i32_16 = arith.constant 1 : i32
      %43 = tpu.dynamic_rotate %41 by %c1_i32_16 dim 1 : vector<8x128xf32>, i32 -> vector<8x128xf32>
      %44 = vector.extract_strided_slice %9 {offsets = [2, 0], sizes = [1, 128], strides = [1, 1]} : vector<8x128xf32> to vector<1x128xf32>
      %45 = vector.broadcast %44 : vector<1x128xf32> to vector<8x128xf32>
      %46 = arith.mulf %45, %41 : vector<8x128xf32>
      %47 = vector.extract_strided_slice %12 {offsets = [2, 0], sizes = [1, 128], strides = [1, 1]} : vector<8x128xf32> to vector<1x128xf32>
      %48 = vector.broadcast %47 : vector<1x128xf32> to vector<8x128xf32>
      %49 = arith.mulf %48, %42 : vector<8x128xf32>
      %50 = arith.addf %46, %49 : vector<8x128xf32>
      %51 = vector.extract_strided_slice %15 {offsets = [2, 0], sizes = [1, 128], strides = [1, 1]} : vector<8x128xf32> to vector<1x128xf32>
      %52 = vector.broadcast %51 : vector<1x128xf32> to vector<8x128xf32>
      %53 = arith.mulf %52, %43 : vector<8x128xf32>
      %54 = arith.addf %50, %53 : vector<8x128xf32>
      %c127_i32_17 = arith.constant 127 : i32
      %55 = tpu.dynamic_rotate %54 by %c127_i32_17 dim 1 : vector<8x128xf32>, i32 -> vector<8x128xf32>
      %c1_i32_18 = arith.constant 1 : i32
      %56 = tpu.dynamic_rotate %54 by %c1_i32_18 dim 1 : vector<8x128xf32>, i32 -> vector<8x128xf32>
      %57 = vector.extract_strided_slice %9 {offsets = [3, 0], sizes = [1, 128], strides = [1, 1]} : vector<8x128xf32> to vector<1x128xf32>
      %58 = vector.broadcast %57 : vector<1x128xf32> to vector<8x128xf32>
      %59 = arith.mulf %58, %54 : vector<8x128xf32>
      %60 = vector.extract_strided_slice %12 {offsets = [3, 0], sizes = [1, 128], strides = [1, 1]} : vector<8x128xf32> to vector<1x128xf32>
      %61 = vector.broadcast %60 : vector<1x128xf32> to vector<8x128xf32>
      %62 = arith.mulf %61, %55 : vector<8x128xf32>
      %63 = arith.addf %59, %62 : vector<8x128xf32>
      %64 = vector.extract_strided_slice %15 {offsets = [3, 0], sizes = [1, 128], strides = [1, 1]} : vector<8x128xf32> to vector<1x128xf32>
      %65 = vector.broadcast %64 : vector<1x128xf32> to vector<8x128xf32>
      %66 = arith.mulf %65, %56 : vector<8x128xf32>
      %67 = arith.addf %63, %66 : vector<8x128xf32>
      %c127_i32_19 = arith.constant 127 : i32
      %68 = tpu.dynamic_rotate %67 by %c127_i32_19 dim 1 : vector<8x128xf32>, i32 -> vector<8x128xf32>
      %c1_i32_20 = arith.constant 1 : i32
      %69 = tpu.dynamic_rotate %67 by %c1_i32_20 dim 1 : vector<8x128xf32>, i32 -> vector<8x128xf32>
      %70 = vector.extract_strided_slice %9 {offsets = [4, 0], sizes = [1, 128], strides = [1, 1]} : vector<8x128xf32> to vector<1x128xf32>
      %71 = vector.broadcast %70 : vector<1x128xf32> to vector<8x128xf32>
      %72 = arith.mulf %71, %67 : vector<8x128xf32>
      %73 = vector.extract_strided_slice %12 {offsets = [4, 0], sizes = [1, 128], strides = [1, 1]} : vector<8x128xf32> to vector<1x128xf32>
      %74 = vector.broadcast %73 : vector<1x128xf32> to vector<8x128xf32>
      %75 = arith.mulf %74, %68 : vector<8x128xf32>
      %76 = arith.addf %72, %75 : vector<8x128xf32>
      %77 = vector.extract_strided_slice %15 {offsets = [4, 0], sizes = [1, 128], strides = [1, 1]} : vector<8x128xf32> to vector<1x128xf32>
      %78 = vector.broadcast %77 : vector<1x128xf32> to vector<8x128xf32>
      %79 = arith.mulf %78, %69 : vector<8x128xf32>
      %80 = arith.addf %76, %79 : vector<8x128xf32>
      %c127_i32_21 = arith.constant 127 : i32
      %81 = tpu.dynamic_rotate %80 by %c127_i32_21 dim 1 : vector<8x128xf32>, i32 -> vector<8x128xf32>
      %c1_i32_22 = arith.constant 1 : i32
      %82 = tpu.dynamic_rotate %80 by %c1_i32_22 dim 1 : vector<8x128xf32>, i32 -> vector<8x128xf32>
      %83 = vector.extract_strided_slice %9 {offsets = [5, 0], sizes = [1, 128], strides = [1, 1]} : vector<8x128xf32> to vector<1x128xf32>
      %84 = vector.broadcast %83 : vector<1x128xf32> to vector<8x128xf32>
      %85 = arith.mulf %84, %80 : vector<8x128xf32>
      %86 = vector.extract_strided_slice %12 {offsets = [5, 0], sizes = [1, 128], strides = [1, 1]} : vector<8x128xf32> to vector<1x128xf32>
      %87 = vector.broadcast %86 : vector<1x128xf32> to vector<8x128xf32>
      %88 = arith.mulf %87, %81 : vector<8x128xf32>
      %89 = arith.addf %85, %88 : vector<8x128xf32>
      %90 = vector.extract_strided_slice %15 {offsets = [5, 0], sizes = [1, 128], strides = [1, 1]} : vector<8x128xf32> to vector<1x128xf32>
      %91 = vector.broadcast %90 : vector<1x128xf32> to vector<8x128xf32>
      %92 = arith.mulf %91, %82 : vector<8x128xf32>
      %93 = arith.addf %89, %92 : vector<8x128xf32>
      %c127_i32_23 = arith.constant 127 : i32
      %94 = tpu.dynamic_rotate %93 by %c127_i32_23 dim 1 : vector<8x128xf32>, i32 -> vector<8x128xf32>
      %c1_i32_24 = arith.constant 1 : i32
      %95 = tpu.dynamic_rotate %93 by %c1_i32_24 dim 1 : vector<8x128xf32>, i32 -> vector<8x128xf32>
      %96 = vector.extract_strided_slice %9 {offsets = [6, 0], sizes = [1, 128], strides = [1, 1]} : vector<8x128xf32> to vector<1x128xf32>
      %97 = vector.broadcast %96 : vector<1x128xf32> to vector<8x128xf32>
      %98 = arith.mulf %97, %93 : vector<8x128xf32>
      %99 = vector.extract_strided_slice %12 {offsets = [6, 0], sizes = [1, 128], strides = [1, 1]} : vector<8x128xf32> to vector<1x128xf32>
      %100 = vector.broadcast %99 : vector<1x128xf32> to vector<8x128xf32>
      %101 = arith.mulf %100, %94 : vector<8x128xf32>
      %102 = arith.addf %98, %101 : vector<8x128xf32>
      %103 = vector.extract_strided_slice %15 {offsets = [6, 0], sizes = [1, 128], strides = [1, 1]} : vector<8x128xf32> to vector<1x128xf32>
      %104 = vector.broadcast %103 : vector<1x128xf32> to vector<8x128xf32>
      %105 = arith.mulf %104, %95 : vector<8x128xf32>
      %106 = arith.addf %102, %105 : vector<8x128xf32>
      %c127_i32_25 = arith.constant 127 : i32
      %107 = tpu.dynamic_rotate %106 by %c127_i32_25 dim 1 : vector<8x128xf32>, i32 -> vector<8x128xf32>
      %c1_i32_26 = arith.constant 1 : i32
      %108 = tpu.dynamic_rotate %106 by %c1_i32_26 dim 1 : vector<8x128xf32>, i32 -> vector<8x128xf32>
      %109 = vector.extract_strided_slice %9 {offsets = [7, 0], sizes = [1, 128], strides = [1, 1]} : vector<8x128xf32> to vector<1x128xf32>
      %110 = vector.broadcast %109 : vector<1x128xf32> to vector<8x128xf32>
      %111 = arith.mulf %110, %106 : vector<8x128xf32>
      %112 = vector.extract_strided_slice %12 {offsets = [7, 0], sizes = [1, 128], strides = [1, 1]} : vector<8x128xf32> to vector<1x128xf32>
      %113 = vector.broadcast %112 : vector<1x128xf32> to vector<8x128xf32>
      %114 = arith.mulf %113, %107 : vector<8x128xf32>
      %115 = arith.addf %111, %114 : vector<8x128xf32>
      %116 = vector.extract_strided_slice %15 {offsets = [7, 0], sizes = [1, 128], strides = [1, 1]} : vector<8x128xf32> to vector<1x128xf32>
      %117 = vector.broadcast %116 : vector<1x128xf32> to vector<8x128xf32>
      %118 = arith.mulf %117, %108 : vector<8x128xf32>
      %119 = arith.addf %115, %118 : vector<8x128xf32>
      scf.yield %119 : vector<8x128xf32>
    }
    %c5_i32_1 = arith.constant 5 : i32
    %c0_2 = arith.constant 0 : index
    %c0_3 = arith.constant 0 : index
    %3 = vector.load %arg5[%c0_2, %c0_3] : memref<1x128xf32, #tpu.memory_space<vmem>>, vector<1x128xf32>
    %4 = vector.broadcast %3 : vector<1x128xf32> to vector<8x128xf32>
    %5 = arith.addf %2, %4 : vector<8x128xf32>
    %c0_4 = arith.constant 0 : index
    %c0_5 = arith.constant 0 : index
    %6 = vector.load %arg6[%c0_4, %c0_5] : memref<8x128xf32, #tpu.memory_space<vmem>>, vector<8x128xf32>
    tpu.vector_store %arg6[%c0_4, %c0_5], %5 {strides = array<i32>} : memref<8x128xf32, #tpu.memory_space<vmem>>, vector<8x128xf32>,
    return
  }
  func.func @transform_0(%arg0: i32) -> (i32, i32) {
    %c0_i32 = arith.constant 0 : i32
    %c0_i32_0 = arith.constant 0 : i32
    return %arg0, %c0_i32 : i32, i32
  }
  func.func @transform_1(%arg0: i32) -> (i32, i32, i32) {
    %c0_i32 = arith.constant 0 : i32
    %c0_i32_0 = arith.constant 0 : i32
    %c0_i32_1 = arith.constant 0 : i32
    %c0_i32_2 = arith.constant 0 : i32
    return %c0_i32, %c0_i32_0, %c0_i32_1 : i32, i32, i32
  }
  func.func @transform_2(%arg0: i32) -> (i32, i32, i32) {
    %c0_i32 = arith.constant 0 : i32
    %c0_i32_0 = arith.constant 0 : i32
    %c0_i32_1 = arith.constant 0 : i32
    %c0_i32_2 = arith.constant 0 : i32
    return %c0_i32, %c0_i32_0, %c0_i32_1 : i32, i32, i32
  }
  func.func @transform_3(%arg0: i32) -> (i32, i32, i32) {
    %c0_i32 = arith.constant 0 : i32
    %c0_i32_0 = arith.constant 0 : i32
    %c0_i32_1 = arith.constant 0 : i32
    %c0_i32_2 = arith.constant 0 : i32
    return %c0_i32, %c0_i32_0, %c0_i32_1 : i32, i32, i32
  }
  func.func @transform_4(%arg0: i32) -> (i32, i32) {
    %c0_i32 = arith.constant 0 : i32
    %c0_i32_0 = arith.constant 0 : i32
    %c0_i32_1 = arith.constant 0 : i32
    return %c0_i32, %c0_i32_0 : i32, i32
  }
  func.func @transform_5(%arg0: i32) -> (i32, i32) {
    %c0_i32 = arith.constant 0 : i32
    %c0_i32_0 = arith.constant 0 : i32
    return %arg0, %c0_i32 : i32, i32
  }
}

</mosaic_0001>

<bundles_post_ra>
// kernel: tile.8
= control target key start
LH: loop header
LB: loop body
LE: loop exit
PB: predicated region body
PF: predicated region fallthrough
CT: control target
= control target key end

     0   :  { %s22_s0 = inlined_call_operand.vmem [shape: f32[32], index: 0, kind: input, shape index: {}]   ;;  %s23_s1 = inlined_call_operand.vmem [shape: f32[4,32], index: 1, kind: output, shape index: {}]  }
   0x1   :  { %v4_v0 = vld [vmem:[%s22_s0] ss:$0 sm:$0xff] }
   0x2   :  { %5 = vst [vmem:[%s23_s1] sm:$0xf] %v4_v0 }

// kernel: tile.9
= control target key start
LH: loop header
LB: loop body
LE: loop exit
PB: predicated region body
PF: predicated region fallthrough
CT: control target
= control target key end

     0   :  { %s37_s8 = smov 32   ;;  %s38_s9 = smov 64   ;;  %vm7_vm0 = vcmask 261120   ;;  %vm13_vm1 = vcmask 1048320   ;;  %vm19_vm2 = vcmask 785920   ;;  %vm25_vm3 = vcmask 523520   ;;  %s55_s0 = inlined_call_operand.vmem [shape: f32[4,32], index: 0, kind: input, shape index: {}]   ;;  %s56_s1 = inlined_call_operand.vmem [shape: f32[1,128], index: 1, kind: output, shape index: {}]  }
   0x1   :  { %v4_v0 = vld [vmem:[%s55_s0] sm:$0xf]  ;;  %s36_s0 = smov 96  }
   0x2   :  { %5 = vst [vmem:[#allocation1] sm:$0xf] %v4_v0 }
   0x9   :  { %v10_v1 = vld [vmem:[#allocation1 + $0x3] sm:$0x1]   ;;  %v22_v2 = vld [vmem:[#allocation1 + $0x1] sm:$0x1]   ;;  %v16_v3 = vld [vmem:[#allocation1 + $0x2] sm:$0x1]  }
   0xa   :  { %11 = vrot.lane.b32.xlu0 %v10_v1, %s36_s0  ;;  %23 = vrot.lane.b32.xlu1 %v22_v2, %s37_s8  ;;  %v6_v4 = vld [vmem:[#allocation1] sm:$0x1]  }
   0xb   :  { %8 = vst.msk [vmem:[#allocation0] sm:$0x1] %vm7_vm0, %v6_v4  }
  0x12   :  { %17 = vrot.lane.b32.xlu0 %v16_v3, %s38_s9 }
  0x7c   :  { %v12_v5 = vpop.permute.xlu0 %11   ;;  %v24_v6 = vpop.permute.xlu1 %23  }
  0x7d   :  { %14 = vst.msk [vmem:[#allocation0] sm:$0x1] %vm13_vm1, %v12_v5  }
  0x84   :  { %v18_v7 = vpop.permute.xlu0 %17  }
  0x85   :  { %20 = vst.msk [vmem:[#allocation0] sm:$0x1] %vm19_vm2, %v18_v7  }
  0x86   :  { %26 = vst.msk [vmem:[#allocation0] sm:$0x1] %vm25_vm3, %v24_v6  }
  0x8d   :  { %v29_v8 = vld [vmem:[#allocation0] sm:$0x1] }
  0x8e   :  { %32 = vst [vmem:[%s56_s1] sm:$0x1] %v29_v8 }

// kernel: ortho_layer_forward.1
= control target key start
LH: loop header
LB: loop body
LE: loop exit
PB: predicated region body
PF: predicated region fallthrough
CT: control target
= control target key end

     0   :  { %s228_s20 = smov 0   ;;  %s301_s0 = inlined_call_operand.vmem [shape: f32[8,128], index: 0, kind: input, shape index: {}]   ;;  %s302_s1 = inlined_call_operand.vmem [shape: f32[5,8,128], index: 1, kind: input, shape index: {}]   ;;  %s303_s2 = inlined_call_operand.vmem [shape: f32[5,8,128], index: 2, kind: input, shape index: {}]   ;;  %s304_s3 = inlined_call_operand.vmem [shape: f32[5,8,128], index: 3, kind: input, shape index: {}]   ;;  %s305_s4 = inlined_call_operand.vmem [shape: f32[1,128], index: 4, kind: input, shape index: {}]   ;;  %s306_s5 = inlined_call_operand.vmem [shape: f32[8,128], index: 5, kind: output, shape index: {}]  }
   0x1   :  { %v20_v0 = vld [vmem:[%s301_s0] sm:$0xff]  }
   0x2 LB: > { %s191_s21 = smov 127   ;;  %s192_s22 = smov 1   ;;  %s189_s20 = sphi %s228_s20, %s26_s20   ;;  %v185_v0 = vphi %v20_v0, %v307_v0  }
   0x3   : > { %35 = vrot.lane.b32.xlu0 %v185_v0, %s191_s21  ;;  %s155_s23 = sshll.u32 %s189_s20, 3  ;;  %s26_s20 = sadd.s32 1, %s189_s20  }
   0x4   : > { %s29_s25 = scalar_lea.vmem %s302_s1, %s155_s23  ;;  %s31_s28 = scalar_lea.vmem %s303_s2, %s155_s23 }
   0x5   : > { %v243_v1 = vld [vmem:[%s29_s25] sm:$0xff]  ;;  %s33_s6 = scalar_lea.vmem %s304_s3, %s155_s23  ;;  %p23_p0 = scmp.ge.s32.totalorder %s26_s20, 5  }
   0x6   : > { %v245_v2 = vld [vmem:[%s31_s28] sm:$0xff]  ;;  %v39_v4 = vperm.slane %v243_v1, 0  ;;  %v51_v16 = vperm.slane %v243_v1, 1  ;;  %v63_v26 = vperm.slane %v243_v1, 2  ;;  %v75_v34 = vperm.slane %v243_v1, 3 }
   0x7   : > { %v41_v5 = vperm.slane %v245_v2, 0  ;;  %v252_v6 = vld [vmem:[%s33_s6] sm:$0xff]  ;;  %v53_v15 = vperm.slane %v245_v2, 1  ;;  %v65_v25 = vperm.slane %v245_v2, 2  ;;  %v77_v35 = vperm.slane %v245_v2, 3 }
   0x8   : > { %v40_v7 = vmul.f32 %v185_v0, %v39_v4  ;;  %v44_v9 = vperm.slane %v252_v6, 0  ;;  %v56_v18 = vperm.slane %v252_v6, 1  ;;  %v68_v28 = vperm.slane %v252_v6, 2 }
   0x9   : > { %v80_v36 = vperm.slane %v252_v6, 3  ;;  %v89_v44 = vperm.slane %v245_v2, 4  ;;  %v87_v46 = vperm.slane %v243_v1, 4  ;;  %v92_v48 = vperm.slane %v252_v6, 4 }
   0xa   : > { %v99_v54 = vperm.slane %v243_v1, 5  ;;  %v101_v55 = vperm.slane %v245_v2, 5  ;;  %v104_v56 = vperm.slane %v252_v6, 5  ;;  %v116_v4 = vperm.slane %v252_v6, 6 }
   0xb   : > { %37 = vrot.lane.b32.xlu0 %v185_v0, %s192_s22  ;;  %v111_v0 = vperm.slane %v243_v1, 6 }
  0x75   : > { %v36_v3 = vpop.permute.xlu0 %35 }
  0x76   : > { %v42_v8 = vmul.f32 %v41_v5, %v36_v3  ;;  %v113_v3 = vperm.slane %v245_v2, 6 }
  0x78   : > { %v43_v11 = vadd.f32 %v42_v8, %v40_v7 }
  0x7d   : > { %v38_v10 = vpop.permute.xlu0 %37 }
  0x7e   : > { %v45_v12 = vmul.f32 %v44_v9, %v38_v10 }
  0x80   : > { %v46_v13 = vadd.f32 %v45_v12, %v43_v11 }
  0x82   : > { %47 = vrot.lane.b32.xlu1 %v46_v13, %s191_s21  ;;  %v52_v19 = vmul.f32 %v51_v16, %v46_v13 }
  0x8a   : > { %49 = vrot.lane.b32.xlu1 %v46_v13, %s192_s22  ;;  %v125_v13 = vperm.slane %v245_v2, 7 }
  0xf4   : > { %v48_v14 = vpop.permute.xlu1 %47 }
  0xf5   : > { %v54_v17 = vmul.f32 %v53_v15, %v48_v14  ;;  %v123_v15 = vperm.slane %v243_v1, 7  ;;  %v174_v1 = vld [vmem:[%s305_s4] ss:$0 sm:$0xff] (%p23_p0) }
  0xf7   : > { %v55_v21 = vadd.f32 %v54_v17, %v52_v19  ;;  %v128_v17 = vperm.slane %v252_v6, 7 }
  0xfc   : > { %v50_v20 = vpop.permute.xlu1 %49 }
  0xfd   : > { %v57_v22 = vmul.f32 %v56_v18, %v50_v20 }
  0xff   : > { %v58_v23 = vadd.f32 %v57_v22, %v55_v21 }
 0x101   : > { %59 = vrot.lane.b32.xlu2 %v58_v23, %s191_s21  ;;  %v64_v29 = vmul.f32 %v63_v26, %v58_v23 }
 0x109   : > { %61 = vrot.lane.b32.xlu2 %v58_v23, %s192_s22 }
 0x15b   : > { %v60_v24 = vpop.permute.xlu2 %59 }
 0x15c   : > { %v66_v27 = vmul.f32 %v65_v25, %v60_v24 }
 0x15e   : > { %v67_v31 = vadd.f32 %v66_v27, %v64_v29 }
 0x163   : > { %v62_v30 = vpop.permute.xlu2 %61 }
 0x164   : > { %v69_v32 = vmul.f32 %v68_v28, %v62_v30 }
 0x166   : > { %v70_v33 = vadd.f32 %v69_v32, %v67_v31 }
 0x168   : > { %73 = vrot.lane.b32.xlu1 %v70_v33, %s192_s22  ;;  %71 = vrot.lane.b32.xlu0 %v70_v33, %s191_s21  ;;  %v76_v39 = vmul.f32 %v75_v34, %v70_v33 }
 0x1da   : > { %v74_v37 = vpop.permute.xlu1 %73  ;;  %v72_v38 = vpop.permute.xlu0 %71 }
 0x1db   : > { %v78_v40 = vmul.f32 %v77_v35, %v72_v38  ;;  %v81_v41 = vmul.f32 %v80_v36, %v74_v37 }
 0x1dd   : > { %v79_v42 = vadd.f32 %v78_v40, %v76_v39 }
 0x1df   : > { %v82_v43 = vadd.f32 %v81_v41, %v79_v42 }
 0x1e1   : > { %85 = vrot.lane.b32.xlu0 %v82_v43, %s192_s22  ;;  %83 = vrot.lane.b32.xlu2 %v82_v43, %s191_s21  ;;  %v88_v49 = vmul.f32 %v87_v46, %v82_v43 }
 0x23b   : > { %v84_v45 = vpop.permute.xlu2 %83 }
 0x23c   : > { %v90_v47 = vmul.f32 %v89_v44, %v84_v45 }
 0x23e   : > { %v91_v51 = vadd.f32 %v90_v47, %v88_v49 }
 0x253   : > { %v86_v50 = vpop.permute.xlu0 %85 }
 0x254   : > { %v93_v52 = vmul.f32 %v92_v48, %v86_v50 }
 0x256   : > { %v94_v53 = vadd.f32 %v93_v52, %v91_v51 }
 0x258   : > { %97 = vrot.lane.b32.xlu2 %v94_v53, %s192_s22  ;;  %95 = vrot.lane.b32.xlu1 %v94_v53, %s191_s21  ;;  %v100_v59 = vmul.f32 %v99_v54, %v94_v53 }
 0x2b2   : > { %v98_v57 = vpop.permute.xlu2 %97 }
 0x2b3   : > { %v105_v61 = vmul.f32 %v104_v56, %v98_v57 }
 0x2ca   : > { %v96_v58 = vpop.permute.xlu1 %95 }
 0x2cb   : > { %v102_v60 = vmul.f32 %v101_v55, %v96_v58 }
 0x2cd   : > { %v103_v62 = vadd.f32 %v102_v60, %v100_v59 }
 0x2cf   : > { %v106_v63 = vadd.f32 %v105_v61, %v103_v62 }
 0x2d1   : > { %109 = vrot.lane.b32.xlu1 %v106_v63, %s192_s22  ;;  %107 = vrot.lane.b32.xlu0 %v106_v63, %s191_s21  ;;  %v112_v8 = vmul.f32 %v111_v0, %v106_v63 }
 0x343   : > { %v110_v5 = vpop.permute.xlu1 %109  ;;  %v108_v7 = vpop.permute.xlu0 %107 }
 0x344   : > { %v114_v9 = vmul.f32 %v113_v3, %v108_v7  ;;  %v117_v10 = vmul.f32 %v116_v4, %v110_v5 }
 0x346   : > { %v115_v11 = vadd.f32 %v114_v9, %v112_v8 }
 0x348   : > { %v118_v12 = vadd.f32 %v117_v10, %v115_v11 }
 0x34a   : > { %121 = vrot.lane.b32.xlu0 %v118_v12, %s192_s22  ;;  %119 = vrot.lane.b32.xlu2 %v118_v12, %s191_s21  ;;  %v124_v18 = vmul.f32 %v123_v15, %v118_v12 }
 0x3a4   : > { %v120_v14 = vpop.permute.xlu2 %119 }
 0x3a5   : > { %v126_v16 = vmul.f32 %v125_v13, %v120_v14 }
 0x3a7   : > { %v127_v20 = vadd.f32 %v126_v16, %v124_v18 }
 0x3bc   : > { %v122_v19 = vpop.permute.xlu0 %121 }
 0x3bd   : > { %v129_v21 = vmul.f32 %v128_v17, %v122_v19  ;;  %25 = sbr.rel (!%p23_p0) target bundleno = 2 (0x2), region = 50 }
 0x3bf   : > { %v130_v22 = vadd.f32 %v129_v21, %v127_v20  }
 0x3c1   : > { %v307_v0 = vmov %v130_v22  ;;  %v135_v2 = vadd.f32 (%p23_p0), %v174_v1, %v130_v22 }
 0x3c3   :  { %136 = vst [vmem:[%s306_s5] sm:$0xff] %v135_v2 }

</bundles_post_ra>
